<compile_context>
chip_gen: v5e
topology: v5e:2x2
jax: 0.10.0
libtpu: 0.0.40
codegen_flags: <defaults>
</compile_context>

<pallas_src>
import functools

import jax
import jax.numpy as jnp
from jax.experimental import pallas as pl
from jax.experimental.pallas import tpu as pltpu


# ----------------------------------------------------------------------------
# Fused kernel: one batch element per grid step.
#   qs = q @ WqT + bq   (scale already folded into WqT / bq)
#   ks = k @ WkT + bk
#   vs = v @ WvT + bv
#   per head h: att_h = softmax(qs_h @ ks_h^T) @ vs_h
#   out = concat_h(att_h) @ WoT + bo
# ----------------------------------------------------------------------------
def _fused_mha_kernel(q_ref, k_ref, v_ref,
                      wq_ref, bq_ref, wk_ref, bk_ref, wv_ref, bv_ref,
                      wo_ref, bo_ref, o_ref, *, head, input_dim, output_dim):
    q = q_ref[...]                      # (Sq, Din)
    k = k_ref[...]                      # (Sk, Din)
    v = v_ref[...]                      # (Sv, Dv)

    # Projections (lane-dense x @ W; weights pre-transposed in the wrapper).
    qs = jnp.dot(q, wq_ref[...], preferred_element_type=jnp.float32) + bq_ref[...]   # (Sq, H*Din)
    ks = jnp.dot(k, wk_ref[...], preferred_element_type=jnp.float32) + bk_ref[...]   # (Sk, H*Din)
    vs = jnp.dot(v, wv_ref[...], preferred_element_type=jnp.float32) + bv_ref[...]   # (Sv, H*Dout)

    # Per-head attention; head is a small static constant -> unrolled Python loop,
    # all intermediates stay in VMEM/vregs.
    att_heads = []
    for h in range(head):
        qh = qs[:, h * input_dim:(h + 1) * input_dim]    # (Sq, Din)   (scale folded in)
        kh = ks[:, h * input_dim:(h + 1) * input_dim]    # (Sk, Din)
        vh = vs[:, h * output_dim:(h + 1) * output_dim]  # (Sk, Dout)

        s = jnp.dot(qh, kh.T, preferred_element_type=jnp.float32)       # (Sq, Sk)
        m = jnp.max(s, axis=-1, keepdims=True)
        p = jnp.exp(s - m)
        p = p / jnp.sum(p, axis=-1, keepdims=True)
        att_heads.append(jnp.dot(p, vh, preferred_element_type=jnp.float32))  # (Sq, Dout)

    att = jnp.concatenate(att_heads, axis=-1)            # (Sq, H*Dout)

    out = jnp.dot(att, wo_ref[...], preferred_element_type=jnp.float32) + bo_ref[...]  # (Sq, Dout)
    o_ref[...] = out.astype(o_ref.dtype)


# ----------------------------------------------------------------------------
# MultiAttention forward (single fused pallas_call)
# ----------------------------------------------------------------------------
def multi_attention(q, k, v, params, *, head, input_dim, output_dim):
    B, Sq, Din = q.shape
    Sk, Dk = k.shape[1], k.shape[2]
    Sv, Dv = v.shape[1], v.shape[2]
    assert Din == input_dim and Dk == input_dim and Dv == output_dim
    assert Sk == Sv, "K and V must share sequence length"

    scale = 1.0 / (input_dim ** 0.5)
    dt = q.dtype

    # One-time (constant-shape) weight prep: transpose to (Din, Dout) layout and fold
    # the attention scale into the Q projection.
    wq_t = (params["wq"].T * scale).astype(dt)                    # (Din,  H*Din)
    bq_s = (params["bq"] * scale).reshape(1, -1).astype(dt)       # (1,    H*Din)
    wk_t = params["wk"].T.astype(dt)                              # (Din,  H*Din)
    bk_s = params["bk"].reshape(1, -1).astype(dt)
    wv_t = params["wv"].T.astype(dt)                              # (Dout, H*Dout)
    bv_s = params["bv"].reshape(1, -1).astype(dt)
    wo_t = params["wo"].T.astype(dt)                              # (H*Dout, Dout)
    bo_s = params["bo"].reshape(1, -1).astype(dt)

    kernel = functools.partial(_fused_mha_kernel, head=head,
                               input_dim=input_dim, output_dim=output_dim)

    def full_spec(arr):
        # Whole weight/bias resident in VMEM; same block every grid step -> DMA'd once.
        return pl.BlockSpec(arr.shape, lambda b: (0, 0))

    return pl.pallas_call(
        kernel,
        out_shape=jax.ShapeDtypeStruct((B, Sq, output_dim), dt),
        grid=(B,),
        in_specs=[
            pl.BlockSpec((None, Sq, Din), lambda b: (b, 0, 0)),
            pl.BlockSpec((None, Sk, Din), lambda b: (b, 0, 0)),
            pl.BlockSpec((None, Sv, Dv), lambda b: (b, 0, 0)),
            full_spec(wq_t), full_spec(bq_s),
            full_spec(wk_t), full_spec(bk_s),
            full_spec(wv_t), full_spec(bv_s),
            full_spec(wo_t), full_spec(bo_s),
        ],
        out_specs=pl.BlockSpec((None, Sq, output_dim), lambda b: (b, 0, 0)),
        compiler_params=pltpu.CompilerParams(
            dimension_semantics=("parallel",)),
    )(q, k, v, wq_t, bq_s, wk_t, bk_s, wv_t, bv_s, wo_t, bo_s)


# ----------------------------------------------------------------------------
# Pure-JAX reference for correctness checking (mirrors the PyTorch module).
# ----------------------------------------------------------------------------
def multi_attention_ref(q, k, v, params, *, head, input_dim, output_dim):
    B, Sq, _ = q.shape
    Sk = k.shape[1]
    Sv = v.shape[1]
    qs = q @ params["wq"].T + params["bq"]
    ks = k @ params["wk"].T + params["bk"]
    vs = v @ params["wv"].T + params["bv"]
    qs = qs.reshape(B, Sq, head, input_dim).transpose(0, 2, 1, 3)
    ks = ks.reshape(B, Sk, head, input_dim).transpose(0, 2, 1, 3)
    vs = vs.reshape(B, Sv, head, output_dim).transpose(0, 2, 1, 3)
    s = jnp.einsum("bhqd,bhkd->bhqk", qs, ks) / (input_dim ** 0.5)
    p = jax.nn.softmax(s, axis=-1)
    att = jnp.einsum("bhqk,bhkd->bhqd", p, vs)
    att = att.transpose(0, 2, 1, 3).reshape(B, Sq, head * output_dim)
    return att @ params["wo"].T + params["bo"]


if __name__ == "__main__":
    # Small shapes consistent with the module's forward; head*dim chosen so the
    # projection outputs are lane-dense (H*Din = 128, H*Dout = 256).
    B, S = 2, 16
    head, input_dim, output_dim = 4, 32, 64

    key = jax.random.PRNGKey(0)
    keys = jax.random.split(key, 16)

    def init_linear(kw, kb, out_f, in_f):
        bound = 1.0 / (in_f ** 0.5)
        w = jax.random.uniform(kw, (out_f, in_f), jnp.float32, -bound, bound)
        b = jax.random.uniform(kb, (out_f,), jnp.float32, -bound, bound)
        return w, b

    wq, bq = init_linear(keys[0], keys[1], input_dim * head, input_dim)
    wk, bk = init_linear(keys[2], keys[3], input_dim * head, input_dim)
    wv, bv = init_linear(keys[4], keys[5], output_dim * head, output_dim)
    wo, bo = init_linear(keys[6], keys[7], output_dim, output_dim * head)
    params = dict(wq=wq, bq=bq, wk=wk, bk=bk, wv=wv, bv=bv, wo=wo, bo=bo)

    q = jax.random.normal(keys[8], (B, S, input_dim), jnp.float32)
    k = jax.random.normal(keys[9], (B, S, input_dim), jnp.float32)
    v = jax.random.normal(keys[10], (B, S, output_dim), jnp.float32)

    out = multi_attention(q, k, v, params, head=head,
                          input_dim=input_dim, output_dim=output_dim)
    out = jax.block_until_ready(out)

    ref = multi_attention_ref(q, k, v, params, head=head,
                              input_dim=input_dim, output_dim=output_dim)
    assert out.shape == (B, S, output_dim)
    assert jnp.allclose(out, ref, atol=1e-4, rtol=1e-4), "mismatch vs reference"

    print("KERNEL_OK")
</pallas_src>

<mosaic_0001>
module attributes {stable_mosaic.version = 11 : i64} {
  func.func @_fused_mha_kernel(%arg0: i32, %arg1: memref<1x16x32xf32, #tpu.memory_space<vmem>>, %arg2: memref<1x16x32xf32, #tpu.memory_space<vmem>>, %arg3: memref<1x16x64xf32, #tpu.memory_space<vmem>>, %arg4: memref<32x128xf32, #tpu.memory_space<vmem>>, %arg5: memref<1x128xf32, #tpu.memory_space<vmem>>, %arg6: memref<32x128xf32, #tpu.memory_space<vmem>>, %arg7: memref<1x128xf32, #tpu.memory_space<vmem>>, %arg8: memref<64x256xf32, #tpu.memory_space<vmem>>, %arg9: memref<1x256xf32, #tpu.memory_space<vmem>>, %arg10: memref<256x64xf32, #tpu.memory_space<vmem>>, %arg11: memref<1x64xf32, #tpu.memory_space<vmem>>, %arg12: memref<1x16x64xf32, #tpu.memory_space<vmem>>) attributes {dimension_semantics = [#tpu.dimension_semantics<parallel>], iteration_bounds = array<i64: 2>, scalar_prefetch = 0 : i64, scratch_operands = 0 : i64, tpu.core_type = #tpu.core_type<tc>, window_params = [{transform_indices = @transform_0, window_bounds = array<i64: 1, 16, 32>}, {transform_indices = @transform_1, window_bounds = array<i64: 1, 16, 32>}, {transform_indices = @transform_2, window_bounds = array<i64: 1, 16, 64>}, {pipeline_mode = #tpu.pipeline_mode<synchronous>, transform_indices = @transform_3, window_bounds = array<i64: 32, 128>}, {pipeline_mode = #tpu.pipeline_mode<synchronous>, transform_indices = @transform_4, window_bounds = array<i64: 1, 128>}, {pipeline_mode = #tpu.pipeline_mode<synchronous>, transform_indices = @transform_5, window_bounds = array<i64: 32, 128>}, {pipeline_mode = #tpu.pipeline_mode<synchronous>, transform_indices = @transform_6, window_bounds = array<i64: 1, 128>}, {pipeline_mode = #tpu.pipeline_mode<synchronous>, transform_indices = @transform_7, window_bounds = array<i64: 64, 256>}, {pipeline_mode = #tpu.pipeline_mode<synchronous>, transform_indices = @transform_8, window_bounds = array<i64: 1, 256>}, {pipeline_mode = #tpu.pipeline_mode<synchronous>, transform_indices = @transform_9, window_bounds = array<i64: 256, 64>}, {pipeline_mode = #tpu.pipeline_mode<synchronous>, transform_indices = @transform_10, window_bounds = array<i64: 1, 64>}, {transform_indices = @transform_11, window_bounds = array<i64: 1, 16, 64>}]} {
    %c0 = arith.constant 0 : index
    %c0_0 = arith.constant 0 : index
    %c0_1 = arith.constant 0 : index
    %0 = vector.load %arg1[%c0, %c0_0, %c0_1] : memref<1x16x32xf32, #tpu.memory_space<vmem>>, vector<1x16x32xf32>
    %1 = vector.shape_cast %0 : vector<1x16x32xf32> to vector<16x32xf32>
    %c0_2 = arith.constant 0 : index
    %c0_3 = arith.constant 0 : index
    %c0_4 = arith.constant 0 : index
    %2 = vector.load %arg2[%c0_2, %c0_3, %c0_4] : memref<1x16x32xf32, #tpu.memory_space<vmem>>, vector<1x16x32xf32>
    %3 = vector.shape_cast %2 : vector<1x16x32xf32> to vector<16x32xf32>
    %c0_5 = arith.constant 0 : index
    %c0_6 = arith.constant 0 : index
    %c0_7 = arith.constant 0 : index
    %4 = vector.load %arg3[%c0_5, %c0_6, %c0_7] : memref<1x16x64xf32, #tpu.memory_space<vmem>>, vector<1x16x64xf32>
    %5 = vector.shape_cast %4 : vector<1x16x64xf32> to vector<16x64xf32>
    %c0_8 = arith.constant 0 : index
    %c0_9 = arith.constant 0 : index
    %6 = vector.load %arg4[%c0_8, %c0_9] : memref<32x128xf32, #tpu.memory_space<vmem>>, vector<32x128xf32>
    %cst = arith.constant dense<0.000000e+00> : vector<16x128xf32>
    %7 = tpu.matmul %1, %6, %cst {dimension_numbers = #tpu.dot_dimension_numbers<[1], [0], [0], [1], [0, 0, 1, 1], [], []>} : vector<16x32xf32>, vector<32x128xf32>, vector<16x128xf32> -> vector<16x128xf32>
    %c0_10 = arith.constant 0 : index
    %c0_11 = arith.constant 0 : index
    %8 = vector.load %arg5[%c0_10, %c0_11] : memref<1x128xf32, #tpu.memory_space<vmem>>, vector<1x128xf32>
    %9 = vector.broadcast %8 : vector<1x128xf32> to vector<16x128xf32>
    %10 = arith.addf %7, %9 : vector<16x128xf32>
    %c0_12 = arith.constant 0 : index
    %c0_13 = arith.constant 0 : index
    %11 = vector.load %arg6[%c0_12, %c0_13] : memref<32x128xf32, #tpu.memory_space<vmem>>, vector<32x128xf32>
    %cst_14 = arith.constant dense<0.000000e+00> : vector<16x128xf32>
    %12 = tpu.matmul %3, %11, %cst_14 {dimension_numbers = #tpu.dot_dimension_numbers<[1], [0], [0], [1], [0, 0, 1, 1], [], []>} : vector<16x32xf32>, vector<32x128xf32>, vector<16x128xf32> -> vector<16x128xf32>
    %c0_15 = arith.constant 0 : index
    %c0_16 = arith.constant 0 : index
    %13 = vector.load %arg7[%c0_15, %c0_16] : memref<1x128xf32, #tpu.memory_space<vmem>>, vector<1x128xf32>
    %14 = vector.broadcast %13 : vector<1x128xf32> to vector<16x128xf32>
    %15 = arith.addf %12, %14 : vector<16x128xf32>
    %c0_17 = arith.constant 0 : index
    %c0_18 = arith.constant 0 : index
    %16 = vector.load %arg8[%c0_17, %c0_18] : memref<64x256xf32, #tpu.memory_space<vmem>>, vector<64x256xf32>
    %cst_19 = arith.constant dense<0.000000e+00> : vector<16x256xf32>
    %17 = tpu.matmul %5, %16, %cst_19 {dimension_numbers = #tpu.dot_dimension_numbers<[1], [0], [0], [1], [0, 0, 1, 1], [], []>} : vector<16x64xf32>, vector<64x256xf32>, vector<16x256xf32> -> vector<16x256xf32>
    %c0_20 = arith.constant 0 : index
    %c0_21 = arith.constant 0 : index
    %18 = vector.load %arg9[%c0_20, %c0_21] : memref<1x256xf32, #tpu.memory_space<vmem>>, vector<1x256xf32>
    %19 = vector.broadcast %18 : vector<1x256xf32> to vector<16x256xf32>
    %20 = arith.addf %17, %19 : vector<16x256xf32>
    %21 = vector.extract_strided_slice %10 {offsets = [0, 0], sizes = [16, 32], strides = [1, 1]} : vector<16x128xf32> to vector<16x32xf32>
    %22 = vector.extract_strided_slice %15 {offsets = [0, 0], sizes = [16, 32], strides = [1, 1]} : vector<16x128xf32> to vector<16x32xf32>
    %23 = vector.extract_strided_slice %20 {offsets = [0, 0], sizes = [16, 64], strides = [1, 1]} : vector<16x256xf32> to vector<16x64xf32>
    %24 = tpu.transpose %22, [1, 0] : vector<16x32xf32> -> vector<32x16xf32>
    %cst_22 = arith.constant dense<0.000000e+00> : vector<16x16xf32>
    %25 = tpu.matmul %21, %24, %cst_22 {dimension_numbers = #tpu.dot_dimension_numbers<[1], [0], [0], [1], [0, 0, 1, 1], [], []>} : vector<16x32xf32>, vector<32x16xf32>, vector<16x16xf32> -> vector<16x16xf32>
    %cst_23 = arith.constant dense<0xFF800000> : vector<16xf32>
    %26 = vector.multi_reduction <maximumf>, %25, %cst_23 [1] : vector<16x16xf32> to vector<16xf32>
    %27 = vector.shape_cast %26 : vector<16xf32> to vector<16x1xf32>
    %28 = vector.broadcast %27 : vector<16x1xf32> to vector<16x16xf32>
    %29 = arith.subf %25, %28 : vector<16x16xf32>
    %30 = math.exp %29 : vector<16x16xf32>
    %cst_24 = arith.constant dense<0.000000e+00> : vector<16xf32>
    %31 = vector.multi_reduction <add>, %30, %cst_24 [1] : vector<16x16xf32> to vector<16xf32>
    %32 = vector.shape_cast %31 : vector<16xf32> to vector<16x1xf32>
    %33 = vector.broadcast %32 : vector<16x1xf32> to vector<16x16xf32>
    %34 = arith.divf %30, %33 : vector<16x16xf32>
    %cst_25 = arith.constant dense<0.000000e+00> : vector<16x64xf32>
    %35 = tpu.matmul %34, %23, %cst_25 {dimension_numbers = #tpu.dot_dimension_numbers<[1], [0], [0], [1], [0, 0, 1, 1], [], []>} : vector<16x16xf32>, vector<16x64xf32>, vector<16x64xf32> -> vector<16x64xf32>
    %36 = vector.extract_strided_slice %10 {offsets = [0, 32], sizes = [16, 32], strides = [1, 1]} : vector<16x128xf32> to vector<16x32xf32>
    %37 = vector.extract_strided_slice %15 {offsets = [0, 32], sizes = [16, 32], strides = [1, 1]} : vector<16x128xf32> to vector<16x32xf32>
    %38 = vector.extract_strided_slice %20 {offsets = [0, 64], sizes = [16, 64], strides = [1, 1]} : vector<16x256xf32> to vector<16x64xf32>
    %39 = tpu.transpose %37, [1, 0] : vector<16x32xf32> -> vector<32x16xf32>
    %cst_26 = arith.constant dense<0.000000e+00> : vector<16x16xf32>
    %40 = tpu.matmul %36, %39, %cst_26 {dimension_numbers = #tpu.dot_dimension_numbers<[1], [0], [0], [1], [0, 0, 1, 1], [], []>} : vector<16x32xf32>, vector<32x16xf32>, vector<16x16xf32> -> vector<16x16xf32>
    %cst_27 = arith.constant dense<0xFF800000> : vector<16xf32>
    %41 = vector.multi_reduction <maximumf>, %40, %cst_27 [1] : vector<16x16xf32> to vector<16xf32>
    %42 = vector.shape_cast %41 : vector<16xf32> to vector<16x1xf32>
    %43 = vector.broadcast %42 : vector<16x1xf32> to vector<16x16xf32>
    %44 = arith.subf %40, %43 : vector<16x16xf32>
    %45 = math.exp %44 : vector<16x16xf32>
    %cst_28 = arith.constant dense<0.000000e+00> : vector<16xf32>
    %46 = vector.multi_reduction <add>, %45, %cst_28 [1] : vector<16x16xf32> to vector<16xf32>
    %47 = vector.shape_cast %46 : vector<16xf32> to vector<16x1xf32>
    %48 = vector.broadcast %47 : vector<16x1xf32> to vector<16x16xf32>
    %49 = arith.divf %45, %48 : vector<16x16xf32>
    %cst_29 = arith.constant dense<0.000000e+00> : vector<16x64xf32>
    %50 = tpu.matmul %49, %38, %cst_29 {dimension_numbers = #tpu.dot_dimension_numbers<[1], [0], [0], [1], [0, 0, 1, 1], [], []>} : vector<16x16xf32>, vector<16x64xf32>, vector<16x64xf32> -> vector<16x64xf32>
    %51 = vector.extract_strided_slice %10 {offsets = [0, 64], sizes = [16, 32], strides = [1, 1]} : vector<16x128xf32> to vector<16x32xf32>
    %52 = vector.extract_strided_slice %15 {offsets = [0, 64], sizes = [16, 32], strides = [1, 1]} : vector<16x128xf32> to vector<16x32xf32>
    %53 = vector.extract_strided_slice %20 {offsets = [0, 128], sizes = [16, 64], strides = [1, 1]} : vector<16x256xf32> to vector<16x64xf32>
    %54 = tpu.transpose %52, [1, 0] : vector<16x32xf32> -> vector<32x16xf32>
    %cst_30 = arith.constant dense<0.000000e+00> : vector<16x16xf32>
    %55 = tpu.matmul %51, %54, %cst_30 {dimension_numbers = #tpu.dot_dimension_numbers<[1], [0], [0], [1], [0, 0, 1, 1], [], []>} : vector<16x32xf32>, vector<32x16xf32>, vector<16x16xf32> -> vector<16x16xf32>
    %cst_31 = arith.constant dense<0xFF800000> : vector<16xf32>
    %56 = vector.multi_reduction <maximumf>, %55, %cst_31 [1] : vector<16x16xf32> to vector<16xf32>
    %57 = vector.shape_cast %56 : vector<16xf32> to vector<16x1xf32>
    %58 = vector.broadcast %57 : vector<16x1xf32> to vector<16x16xf32>
    %59 = arith.subf %55, %58 : vector<16x16xf32>
    %60 = math.exp %59 : vector<16x16xf32>
    %cst_32 = arith.constant dense<0.000000e+00> : vector<16xf32>
    %61 = vector.multi_reduction <add>, %60, %cst_32 [1] : vector<16x16xf32> to vector<16xf32>
    %62 = vector.shape_cast %61 : vector<16xf32> to vector<16x1xf32>
    %63 = vector.broadcast %62 : vector<16x1xf32> to vector<16x16xf32>
    %64 = arith.divf %60, %63 : vector<16x16xf32>
    %cst_33 = arith.constant dense<0.000000e+00> : vector<16x64xf32>
    %65 = tpu.matmul %64, %53, %cst_33 {dimension_numbers = #tpu.dot_dimension_numbers<[1], [0], [0], [1], [0, 0, 1, 1], [], []>} : vector<16x16xf32>, vector<16x64xf32>, vector<16x64xf32> -> vector<16x64xf32>
    %66 = vector.extract_strided_slice %10 {offsets = [0, 96], sizes = [16, 32], strides = [1, 1]} : vector<16x128xf32> to vector<16x32xf32>
    %67 = vector.extract_strided_slice %15 {offsets = [0, 96], sizes = [16, 32], strides = [1, 1]} : vector<16x128xf32> to vector<16x32xf32>
    %68 = vector.extract_strided_slice %20 {offsets = [0, 192], sizes = [16, 64], strides = [1, 1]} : vector<16x256xf32> to vector<16x64xf32>
    %69 = tpu.transpose %67, [1, 0] : vector<16x32xf32> -> vector<32x16xf32>
    %cst_34 = arith.constant dense<0.000000e+00> : vector<16x16xf32>
    %70 = tpu.matmul %66, %69, %cst_34 {dimension_numbers = #tpu.dot_dimension_numbers<[1], [0], [0], [1], [0, 0, 1, 1], [], []>} : vector<16x32xf32>, vector<32x16xf32>, vector<16x16xf32> -> vector<16x16xf32>
    %cst_35 = arith.constant dense<0xFF800000> : vector<16xf32>
    %71 = vector.multi_reduction <maximumf>, %70, %cst_35 [1] : vector<16x16xf32> to vector<16xf32>
    %72 = vector.shape_cast %71 : vector<16xf32> to vector<16x1xf32>
    %73 = vector.broadcast %72 : vector<16x1xf32> to vector<16x16xf32>
    %74 = arith.subf %70, %73 : vector<16x16xf32>
    %75 = math.exp %74 : vector<16x16xf32>
    %cst_36 = arith.constant dense<0.000000e+00> : vector<16xf32>
    %76 = vector.multi_reduction <add>, %75, %cst_36 [1] : vector<16x16xf32> to vector<16xf32>
    %77 = vector.shape_cast %76 : vector<16xf32> to vector<16x1xf32>
    %78 = vector.broadcast %77 : vector<16x1xf32> to vector<16x16xf32>
    %79 = arith.divf %75, %78 : vector<16x16xf32>
    %cst_37 = arith.constant dense<0.000000e+00> : vector<16x64xf32>
    %80 = tpu.matmul %79, %68, %cst_37 {dimension_numbers = #tpu.dot_dimension_numbers<[1], [0], [0], [1], [0, 0, 1, 1], [], []>} : vector<16x16xf32>, vector<16x64xf32>, vector<16x64xf32> -> vector<16x64xf32>
    %81 = tpu.concatenate %35, %50, %65, %80 in 1 : vector<16x64xf32>, vector<16x64xf32>, vector<16x64xf32>, vector<16x64xf32> -> vector<16x256xf32>
    %c0_38 = arith.constant 0 : index
    %c0_39 = arith.constant 0 : index
    %82 = vector.load %arg10[%c0_38, %c0_39] : memref<256x64xf32, #tpu.memory_space<vmem>>, vector<256x64xf32>
    %cst_40 = arith.constant dense<0.000000e+00> : vector<16x64xf32>
    %83 = tpu.matmul %81, %82, %cst_40 {dimension_numbers = #tpu.dot_dimension_numbers<[1], [0], [0], [1], [0, 0, 1, 1], [], []>} : vector<16x256xf32>, vector<256x64xf32>, vector<16x64xf32> -> vector<16x64xf32>
    %c0_41 = arith.constant 0 : index
    %c0_42 = arith.constant 0 : index
    %84 = vector.load %arg11[%c0_41, %c0_42] : memref<1x64xf32, #tpu.memory_space<vmem>>, vector<1x64xf32>
    %85 = vector.broadcast %84 : vector<1x64xf32> to vector<16x64xf32>
    %86 = arith.addf %83, %85 : vector<16x64xf32>
    %c0_43 = arith.constant 0 : index
    %c0_44 = arith.constant 0 : index
    %c0_45 = arith.constant 0 : index
    %87 = vector.load %arg12[%c0_43, %c0_44, %c0_45] : memref<1x16x64xf32, #tpu.memory_space<vmem>>, vector<1x16x64xf32>
    %88 = vector.shape_cast %87 : vector<1x16x64xf32> to vector<16x64xf32>
    %89 = vector.shape_cast %86 : vector<16x64xf32> to vector<1x16x64xf32>
    tpu.vector_store %arg12[%c0_43, %c0_44, %c0_45], %89 {strides = array<i32>} : memref<1x16x64xf32, #tpu.memory_space<vmem>>, vector<1x16x64xf32>,
    return
  }
  func.func @transform_0(%arg0: i32) -> (i32, i32, i32) {
    %c0_i32 = arith.constant 0 : i32
    %c0_i32_0 = arith.constant 0 : i32
    %c0_i32_1 = arith.constant 0 : i32
    return %arg0, %c0_i32, %c0_i32_0 : i32, i32, i32
  }
  func.func @transform_1(%arg0: i32) -> (i32, i32, i32) {
    %c0_i32 = arith.constant 0 : i32
    %c0_i32_0 = arith.constant 0 : i32
    %c0_i32_1 = arith.constant 0 : i32
    return %arg0, %c0_i32, %c0_i32_0 : i32, i32, i32
  }
  func.func @transform_2(%arg0: i32) -> (i32, i32, i32) {
    %c0_i32 = arith.constant 0 : i32
    %c0_i32_0 = arith.constant 0 : i32
    %c0_i32_1 = arith.constant 0 : i32
    return %arg0, %c0_i32, %c0_i32_0 : i32, i32, i32
  }
  func.func @transform_3(%arg0: i32) -> (i32, i32) {
    %c0_i32 = arith.constant 0 : i32
    %c0_i32_0 = arith.constant 0 : i32
    %c0_i32_1 = arith.constant 0 : i32
    return %c0_i32, %c0_i32_0 : i32, i32
  }
  func.func @transform_4(%arg0: i32) -> (i32, i32) {
    %c0_i32 = arith.constant 0 : i32
    %c0_i32_0 = arith.constant 0 : i32
    %c0_i32_1 = arith.constant 0 : i32
    return %c0_i32, %c0_i32_0 : i32, i32
  }
  func.func @transform_5(%arg0: i32) -> (i32, i32) {
    %c0_i32 = arith.constant 0 : i32
    %c0_i32_0 = arith.constant 0 : i32
    %c0_i32_1 = arith.constant 0 : i32
    return %c0_i32, %c0_i32_0 : i32, i32
  }
  func.func @transform_6(%arg0: i32) -> (i32, i32) {
    %c0_i32 = arith.constant 0 : i32
    %c0_i32_0 = arith.constant 0 : i32
    %c0_i32_1 = arith.constant 0 : i32
    return %c0_i32, %c0_i32_0 : i32, i32
  }
  func.func @transform_7(%arg0: i32) -> (i32, i32) {
    %c0_i32 = arith.constant 0 : i32
    %c0_i32_0 = arith.constant 0 : i32
    %c0_i32_1 = arith.constant 0 : i32
    return %c0_i32, %c0_i32_0 : i32, i32
  }
  func.func @transform_8(%arg0: i32) -> (i32, i32) {
    %c0_i32 = arith.constant 0 : i32
    %c0_i32_0 = arith.constant 0 : i32
    %c0_i32_1 = arith.constant 0 : i32
    return %c0_i32, %c0_i32_0 : i32, i32
  }
  func.func @transform_9(%arg0: i32) -> (i32, i32) {
    %c0_i32 = arith.constant 0 : i32
    %c0_i32_0 = arith.constant 0 : i32
    %c0_i32_1 = arith.constant 0 : i32
    return %c0_i32, %c0_i32_0 : i32, i32
  }
  func.func @transform_10(%arg0: i32) -> (i32, i32) {
    %c0_i32 = arith.constant 0 : i32
    %c0_i32_0 = arith.constant 0 : i32
    %c0_i32_1 = arith.constant 0 : i32
    return %c0_i32, %c0_i32_0 : i32, i32
  }
  func.func @transform_11(%arg0: i32) -> (i32, i32, i32) {
    %c0_i32 = arith.constant 0 : i32
    %c0_i32_0 = arith.constant 0 : i32
    %c0_i32_1 = arith.constant 0 : i32
    return %arg0, %c0_i32, %c0_i32_0 : i32, i32, i32
  }
}

</mosaic_0001>

<bundles_post_ra>
// kernel: tpu_custom_call.1
= control target key start
LH: loop header
LB: loop body
LE: loop exit
PB: predicated region body
PF: predicated region fallthrough
CT: control target
= control target key end

     0   :  { %s1954_s0 = inlined_call_operand.vmem [shape: f32[2,16,32], index: 0, kind: input, shape index: {}]   ;;  %s1955_s1 = inlined_call_operand.vmem [shape: f32[2,16,32], index: 1, kind: input, shape index: {}]   ;;  %s1956_s2 = inlined_call_operand.vmem [shape: f32[2,16,64], index: 2, kind: input, shape index: {}]   ;;  %s1957_s3 = inlined_call_operand.vmem [shape: f32[32,128], index: 3, kind: input, shape index: {}]   ;;  %s1958_s4 = inlined_call_operand.vmem [shape: f32[1,128], index: 4, kind: input, shape index: {}]   ;;  %s1959_s5 = inlined_call_operand.vmem [shape: f32[32,128], index: 5, kind: input, shape index: {}]   ;;  %s1960_s6 = inlined_call_operand.vmem [shape: f32[1,128], index: 6, kind: input, shape index: {}]   ;;  %s1961_s7 = inlined_call_operand.vmem [shape: f32[64,256], index: 7, kind: input, shape index: {}]   ;;  %s1962_s8 = inlined_call_operand.vmem [shape: f32[1,256], index: 8, kind: input, shape index: {}]   ;;  %s1963_s9 = inlined_call_operand.vmem [shape: f32[256,64], index: 9, kind: input, shape index: {}]   ;;  %s1964_s10 = inlined_call_operand.vmem [shape: f32[1,64], index: 10, kind: input, shape index: {}]   ;;  %s1965_s11 = inlined_call_operand.hbm [shape: f32[2,16,64], index: 11, kind: output, shape index: {}]  }
   0x1   :  { %1968 = sst [smem:[#allocation6_spill]] %s1954_s0 }
   0x2   :  { %16 = vsyncpa [#allocation3], 0 }
   0x3   :  { %18 = vsyncpa [#allocation3 + $0x1], 0  ;;  %s1544_s17 = smov 0   ;;  %s1546_s18 = smov 0  }
   0x4   :  { %s1548_s19 = smov 0   ;;  %s1550_s20 = smov 0  }
   0x5 LB: > { %s1565_s21 = sadd.s32 4294967295, %s1477_s20   ;;  %s1264_s22 = sadd.s32 4294967294, %s1477_s20   ;;  %s1477_s20 = sphi %s1550_s20, %s1978_s20   ;;  %s1473_s19 = sphi %s1548_s19, %s1977_s19   ;;  %s1469_s18 = sphi %s1546_s18, %s1976_s18   ;;  %s1465_s17 = sphi %s1544_s17, %s1975_s17  }
   0x6   : > { %s1569_s23 = sadd.s32 1, %s1477_s20   ;;  %s277_s24 = sadd.s32 1, %s1473_s19 }
   0x7   : > { %s274_s25 = ssub.s32 %s1477_s20, %s1569_s23  ;;  %p287_p0 = scmp.ne.s32.totalorder %s1473_s19, %s1469_s18 }
   0x8   : > { %p275_p1 = scmp.eq.s32.totalorder %s274_s25, 0  ;;  %p288_p2 = scmp.eq.s32.totalorder %s1565_s21, 1 }
   0x9   : > { %p293_p3 = scmp.ne.s32.totalorder %s1469_s18, %s1465_s17  ;;  %p294_p4 = scmp.eq.s32.totalorder %s1264_s22, 1 }
   0xa   : > { %s1580_s26 = scalar_select %p275_p1, %s1473_s19, %s277_s24  }
   0xb   : > { %p1582_p5 = por %p288_p2, %p287_p0  ;;  %p1586_p6 = por %p294_p4, %p293_p3 }
   0xc   : > { %1969 = sst [smem:[#allocation5_spill]] %s1580_s26  ;;  %p1267_p7 = scmp.ge.s32.totalorder %s1477_s20, 1 }
   0xd   : > { %p360_p8 = scmp.lt.s32.totalorder %s1477_s20, 3 }
   0xf   : > { %p361_p9 = pnand %p1267_p7, %p360_p8 }
  0x10   : > { %p410_p10 = scmp.lt.s32.totalorder (!%p361_p9), %s1565_s21, 1  ;;  %s1972_s0 = sld [smem:[#allocation6_spill]] (!%p361_p9) }
  0x11   : > { %364 = sbr.rel (%p361_p9) target bundleno = 1118 (0x45e), region = 64  ;;  %s1479_s14 = smov (!%p361_p9), 96  }
  0x12   : > { %s1966_s15 = smov (!%p361_p9), 64   ;;  %s1973_s30 = smov (!%p361_p9), 64  }
  0x13   : > { %s407_s24 = sand.u32 (!%p361_p9), 1, %s1469_s18  }
  0x16   : > { %v434_v0 = vld [vmem:[%s1957_s3 + $0x18] sm:$0xff]  ;;  %v433_v2 = vld [vmem:[%s1957_s3 + $0x10] sm:$0xff]  ;;  %v432_v4 = vld [vmem:[%s1957_s3 + $0x8] sm:$0xff]  ;;  %s411_s12 = scalar_select %p410_p10, %s1565_s21, 1  ;;  %vm439_vm0 = vcmask 261120   ;;  %vm528_vm1 = vcmask 523264  }
  0x17   : > { %v472_v1 = vld [vmem:[%s1959_s5 + $0x18] sm:$0xff]  ;;  %458 = vmatpush.msra.mxu2 %v434_v0  ;;  %v471_v3 = vld [vmem:[%s1959_s5 + $0x10] sm:$0xff]  ;;  %v470_v5 = vld [vmem:[%s1959_s5 + $0x8] sm:$0xff]  ;;  %vm616_vm2 = vcmask 130048  }
  0x18   : > { %495 = vmatpush.msra.mxu3 %v472_v1  ;;  %v431_v6 = vld [vmem:[%s1957_s3] sm:$0xff]  ;;  %s1618_s16 = sshll.u32 %s411_s12, 4  ;;  %v520_v16 = vld [vmem:[%s1961_s7 + $0x70] sm:$0xff]  ;;  %s1480_s12 = smov 32   ;;  %v521_v51 = vld [vmem:[%s1961_s7 + $0x78] sm:$0xff] }
  0x19   : > { %459 = vmatpush.msra.mxu2 %v433_v2  ;;  %v469_v7 = vld [vmem:[%s1959_s5] sm:$0xff]  ;;  %s414_s25 = scalar_lea.vmem %s1972_s0, %s1618_s16  ;;  %s419_s13 = scalar_lea.vmem %s1955_s1, %s1618_s16  ;;  %v516_v18 = vld [vmem:[%s1961_s7 + $0x50] sm:$0xff]  ;;  %v519_v52 = vld [vmem:[%s1961_s7 + $0x68] sm:$0xff] }
  0x1a   : > { %496 = vmatpush.msra.mxu3 %v471_v3  ;;  %v425_v8 = vld [vmem:[%s414_s25] sm:$0xff]  ;;  %v426_v10 = vld [vmem:[%s414_s25 + $0x8] sm:$0xff]  ;;  %v512_v26 = vld [vmem:[%s1961_s7 + $0x30] sm:$0xff]  ;;  %s424_s22 = scalar_lea.vmem %s1956_s2, %s1618_s16 }
  0x1b   : > { %460 = vmatpush.msra.mxu2 %v432_v4  ;;  %v427_v9 = vld [vmem:[%s419_s13] sm:$0xff]  ;;  %v428_v11 = vld [vmem:[%s419_s13 + $0x8] sm:$0xff]  ;;  %v508_v28 = vld [vmem:[%s1961_s7 + $0x10] sm:$0xff] }
  0x1c   : > { %497 = vmatpush.msra.mxu3 %v470_v5  ;;  %v1380_v12 = vld [vmem:[%s1958_s4] ss:$0 sm:$0xff]  ;;  %v430_v31 = vld [vmem:[%s424_s22 + $0x8] sm:$0xff]  ;;  %v517_v53 = vld [vmem:[%s1961_s7 + $0x58] sm:$0xff] }
  0x1d   : > { %461 = vmatpush.msra.mxu2 %v431_v6  ;;  %v518_v17 = vld [vmem:[%s1961_s7 + $0x60] sm:$0xff]  ;;  %v515_v54 = vld [vmem:[%s1961_s7 + $0x48] sm:$0xff]  ;;  %v513_v55 = vld [vmem:[%s1961_s7 + $0x38] sm:$0xff] }
  0x1e   : > { %498 = vmatpush.msra.mxu3 %v469_v7  ;;  %1275 = vmatmul.msk.f32.vlgmr.msra.gmra.mxu2 %vm439_vm0, %v425_v8  ;;  %v1381_v19 = vld [vmem:[%s1960_s6] ss:$0 sm:$0xff]  ;;  %v511_v56 = vld [vmem:[%s1961_s7 + $0x28] sm:$0xff]  ;;  %v509_v57 = vld [vmem:[%s1961_s7 + $0x18] sm:$0xff] }
  0x1f   : > { %1277 = vmatmul.msk.f32.vlgmr.msra.gmra.mxu3 %vm439_vm0, %v427_v9  ;;  %543 = vmatpush.msrb.mxu2 %v520_v16  ;;  %v514_v25 = vld [vmem:[%s1961_s7 + $0x40] sm:$0xff]  ;;  %v507_v58 = vld [vmem:[%s1961_s7 + $0x8] sm:$0xff] }
  0x20   : > { %v510_v27 = vld [vmem:[%s1961_s7 + $0x20] sm:$0xff]  ;;  %566 = vmatpush.msrb.mxu3 %v521_v51 }
  0x21   : > { %544 = vmatpush.msrb.mxu2 %v518_v17  ;;  %v506_v29 = vld [vmem:[%s1961_s7] sm:$0xff] }
  0x22   : > { %v429_v30 = vld [vmem:[%s424_s22] sm:$0xff]  ;;  %567 = vmatpush.msrb.mxu3 %v519_v52 }
  0x23   : > { %545 = vmatpush.msrb.mxu2 %v516_v18  ;;  %v1691_v45 = vld [vmem:[%s1962_s8] sm:$0x3] }
  0x24   : > { %v524_v46 = vperm.slane %v1691_v45, 0  ;;  %568 = vmatpush.msrb.mxu3 %v517_v53 }
  0x25   : > { %546 = vmatpush.msrb.mxu2 %v514_v25 }
  0x26   : > { %1276 = vmatmul.msk.f32.gmra.mxu2 %vm439_vm0, %v426_v10  ;;  %569 = vmatpush.msrb.mxu3 %v515_v54 }
  0x27   : > { %1278 = vmatmul.msk.f32.gmra.mxu3 %vm439_vm0, %v428_v11  ;;  %547 = vmatpush.msrb.mxu2 %v512_v26 }
  0x28   : > { %570 = vmatpush.msrb.mxu3 %v513_v55 }
  0x29   : > { %548 = vmatpush.msrb.mxu2 %v510_v27 }
  0x2a   : > { %571 = vmatpush.msrb.mxu3 %v511_v56 }
  0x2b   : > { %549 = vmatpush.msrb.mxu2 %v508_v28 }
  0x2c   : > { %572 = vmatpush.msrb.mxu3 %v509_v57 }
  0x2d   : > { %550 = vmatpush.msrb.mxu2 %v506_v29 }
  0x2e   : > { %1279 = vmatmul.msk.f32.vlgmr.msrb.gmra.mxu2 %vm528_vm1, %v429_v30  ;;  %573 = vmatpush.msrb.mxu3 %v507_v58 }
  0x2f   : > { %1281 = vmatmul.msk.f32.vlgmr.msrb.gmra.mxu3 %vm528_vm1, %v429_v30 }
  0x36   : > { %1280 = vmatmul.msk.f32.gmra.mxu2 %vm528_vm1, %v430_v31 }
  0x37   : > { %1282 = vmatmul.msk.f32.gmra.mxu3 %vm528_vm1, %v430_v31 }
  0xa1   : > { %v463_v13 = vpop.f32.mrf.mxu2 }
  0xa2   : > { %v500_v14 = vpop.f32.mrf.mxu3  ;;  %v464_v15 = vadd.f32 %v1380_v12, %v463_v13 }
  0xa3   : > { %v501_v24 = vadd.f32 %v1381_v19, %v500_v14  ;;  %v525_v14 = vperm.slane %v1691_v45, 1 }
  0xa4   : > { %694 = vrot.lane.b32.xlu1 %v464_v15, %s1479_s14 }
  0xa9   : > { %v466_v20 = vpop.f32.mrf.mxu2 }
  0xaa   : > { %v503_v21 = vpop.f32.mrf.mxu3  ;;  %v467_v22 = vadd.f32 %v1380_v12, %v466_v20 }
  0xab   : > { %v504_v23 = vadd.f32 %v1381_v19, %v503_v21 }
  0xac   : > { %696 = vrot.lane.b32.xlu1 %v467_v22, %s1479_s14 }
  0xad   : > { %940 = vrot.lane.b32.xlu2 %v504_v23, %s1480_s12  ;;  %700 = vrot.lane.b32.xlu0 %v504_v23, %s1479_s14 }
  0xae   : > { %1283 = vmatpush.xpose.msk.msra.mxu0 %vm439_vm0, %v504_v23 }
  0xb1   : > { %v552_v44 = vpop.f32.mrf.mxu2 }
  0xb2   : > { %1284 = vmatpush.xpose.msk.msra.mxu0 %vm439_vm0, %v501_v24  ;;  %v1694_v47 = vadd.f32 %v552_v44, %v524_v46  ;;  %v575_v12 = vpop.f32.mrf.mxu3 }
  0xb3   : > { %v576_v21 = vadd.f32 %v575_v12, %v525_v14 }
  0xb4   : > { %936 = vrot.lane.b32.xlu1 %v467_v22, %s1480_s12 }
  0xb5   : > { %938 = vrot.lane.b32.xlu2 %v501_v24, %s1480_s12  ;;  %698 = vrot.lane.b32.xlu0 %v501_v24, %s1479_s14  ;;  %s1315_s14 = sshll.u32 %s1565_s21, 4  ;;  %s1163_s21 = scalar_lea.sflag [#allocation3], %s407_s24 }
  0xb6   : > { %1285 = vmatmul.msk.f32.vlgmr.msra.gmra.mxu0 %vm439_vm0, %v464_v15  ;;  %s1174_s13 = scalar_lea.hbm %s1965_s11, %s1315_s14  ;;  %s1435_s14 = scalar_lea.hbm %s1965_s11, 32 }
  0xb9   : > { %v555_v48 = vpop.f32.mrf.mxu2 }
  0xba   : > { %v1696_v49 = vadd.f32 %v555_v48, %v524_v46  ;;  %v578_v18 = vpop.f32.mrf.mxu3 }
  0xbb   : > { %v579_v20 = vadd.f32 %v578_v18, %v525_v14 }
  0xbc   : > { %818 = vrot.lane.b32.xlu1 %v464_v15, %s1966_s15  ;;  %v1360_v50 = vpack.i.bf16 %v1694_v47, %v1696_v49  ;;  %685 = vmatpush.msra.mxu1 %v1696_v49 }
  0xbd   : > { %824 = vrot.lane.b32.xlu2 %v504_v23, %s1966_s15  ;;  %934 = vrot.lane.b32.xlu0 %v464_v15, %s1480_s12  ;;  %s1177_s12 = sshll.u32 %s1174_s13, 4  ;;  %s1178_s12 = int_to_ptr.hbm [resolvable:$true] %s1177_s12 }
  0xbe   : > { %1286 = vmatmul.msk.f32.gmra.mxu0 %vm439_vm0, %v467_v22  ;;  %686 = vmatpush.msra.mxu1 %v1694_v47  ;;  %s1429_s22 = sshra.s32 %s1178_s12, 4  ;;  %s1430_s22 = int_to_ptr.hbm [resolvable:$true] %s1429_s22 }
  0xbf   : > { %s1431_s0 = scalar_lea.hbm %s1430_s22, 16  ;;  %p1436_p0 = scmp.lt.s32.totalorder %s1430_s22, %s1965_s11 }
  0xc0   : > { %925 = vmatpush.msrb.mxu1 %v579_v20  ;;  %p1432_p11 = scmp.ne.s32.totalorder %s1430_s22, %s1431_s0  ;;  %p1437_p1 = scmp.lt.s32.totalorder %s1435_s14, %s1431_s0 }
  0xc2   : > { %926 = vmatpush.msrb.mxu1 %v576_v21  ;;  %p1433_p12 = pnand %p1432_p11, %p1582_p5  ;;  %p1438_p2 = por %p1437_p1, %p1436_p0 }
  0xc4   : > { %p1434_p13 = pneg %p1433_p12 }
  0xc5   : > { %820 = vrot.lane.b32.xlu2 %v467_v22, %s1966_s15  ;;  %822 = vrot.lane.b32.xlu0 %v501_v24, %s1966_s15  ;;  %s1268_s15 = sshll.u32 %s407_s24, 4 }
  0xc6   : > { %s409_s25 = scalar_lea.vmem [#allocation2], %s1268_s15  ;;  %p1439_p3 = pnand %p1438_p2, %p1434_p13 }
  0xc7   : > { %s1175_s26 = sshll.u32 %s409_s25, 4  ;;  %s1176_s26 = int_to_ptr.vmem [resolvable:$true] %s1175_s26 }
 0x107   : > { %v941_v32 = vpop.permute.xlu2 %940 }
 0x10f   : > { %v939_v33 = vpop.permute.xlu2 %938 }
 0x116   : > { %v695_v35 = vpop.permute.xlu1 %694 }
 0x117   : > { %v825_v34 = vpop.permute.xlu2 %824 }
 0x118   : > { %1295 = vmatpush.xpose.msk.msrb.mxu0 %vm439_vm0, %v825_v34 }
 0x11e   : > { %v697_v37 = vpop.permute.xlu1 %696 }
 0x11f   : > { %v701_v36 = vpop.permute.xlu0 %700  ;;  %v821_v43 = vpop.permute.xlu2 %820 }
 0x120   : > { %1289 = vmatpush.xpose.msk.msra.mxu2 %vm439_vm0, %v701_v36 }
 0x126   : > { %v937_v40 = vpop.permute.xlu1 %936 }
 0x127   : > { %v699_v38 = vpop.permute.xlu0 %698 }
 0x128   : > { %1290 = vmatpush.xpose.msk.msra.mxu2 %vm439_vm0, %v699_v38 }
 0x12b   : > { %1291 = vmatmul.msk.f32.vlgmr.msra.gmra.mxu2 %vm439_vm0, %v695_v35 }
 0x12c   : > { %1301 = vmatpush.xpose.msk.msrb.mxu2 %vm439_vm0, %v941_v32 }
 0x12e   : > { %v819_v42 = vpop.permute.xlu1 %818 }
 0x12f   : > { %v935_v39 = vpop.permute.xlu0 %934 }
 0x130   : > { %1302 = vmatpush.xpose.msk.msrb.mxu2 %vm439_vm0, %v939_v33 }
 0x133   : > { %1292 = vmatmul.msk.f32.gmra.mxu2 %vm439_vm0, %v697_v37  ;;  %v610_v59 = vpop.f32.mrf.mxu0 }
 0x134   : > { %v617_v1 = vsel %vm616_vm2, %v610_v59, -inf }
 0x137   : > { %v823_v41 = vpop.permute.xlu0 %822 }
 0x138   : > { %1296 = vmatpush.xpose.msk.msrb.mxu0 %vm439_vm0, %v823_v41 }
 0x13b   : > { %1297 = vmatmul.msk.f32.vlgmr.msrb.gmra.mxu0 %vm439_vm0, %v819_v42  ;;  %1303 = vmatmul.msk.f32.vlgmr.msrb.gmra.mxu2 %vm439_vm0, %v935_v39  ;;  %v1729_v62 = vpop.f32.mrf.mxu0 }
 0x13c   : > { %v620_v8 = vsel %vm616_vm2, %v1729_v62, -inf }
 0x143   : > { %1298 = vmatmul.msk.f32.gmra.mxu0 %vm439_vm0, %v821_v43  ;;  %1304 = vmatmul.msk.f32.gmra.mxu2 %vm439_vm0, %v937_v40  ;;  %v1365_v43 = vpack.i.bf16 %v576_v21, %v579_v20 }
 0x1ae   : > { %v727_v60 = vpop.f32.mrf.mxu2 }
 0x1af   : > { %v733_v61 = vsel %vm616_vm2, %v727_v60, -inf }
 0x1b0   : > { %734 = vmax.xlane.f32.xlu0 %v733_v61 }
 0x1b6   : > { %v730_v63 = vpop.f32.mrf.mxu2 }
 0x1b7   : > { %v736_v0 = vsel %vm616_vm2, %v730_v63, -inf }
 0x1b8   : > { %737 = vmax.xlane.f32.xlu1 %v736_v0  ;;  %618 = vmax.xlane.f32.xlu0 %v617_v1  ;;  %v851_v2 = vpop.f32.mrf.mxu0 }
 0x1b9   : > { %v857_v5 = vsel %vm616_vm2, %v851_v2, -inf }
 0x1be   : > { %v967_v3 = vpop.f32.mrf.mxu2 }
 0x1bf   : > { %v973_v4 = vsel %vm616_vm2, %v967_v3, -inf }
 0x1c0   : > { %974 = vmax.xlane.f32.xlu2 %v973_v4  ;;  %858 = vmax.xlane.f32.xlu1 %v857_v5  ;;  %v854_v23 = vpop.f32.mrf.mxu0 }
 0x1c1   : > { %v860_v28 = vsel %vm616_vm2, %v854_v23, -inf }
 0x1c6   : > { %v970_v6 = vpop.f32.mrf.mxu2 }
 0x1c7   : > { %v976_v7 = vsel %vm616_vm2, %v970_v6, -inf }
 0x1c8   : > { %977 = vmax.xlane.f32.xlu2 %v976_v7 }
 0x1d0   : > { %621 = vmax.xlane.f32.xlu2 %v620_v8 }
 0x223   : > { %v735_v9 = vpop.xlane.xlu0 %734 }
 0x224   : > { %v739_v10 = vsub.f32 %v727_v60, %v735_v9 }
 0x226   : > { %v741_v11 = vmul.f32 1.442695, %v739_v10 }
 0x228   : > { %1383 = vpow2.f32 %v741_v11 }
 0x22b   : > { %v738_v13 = vpop.xlane.xlu1 %737  ;;  %v619_v29 = vpop.xlane.xlu0 %618 }
 0x22c   : > { %v740_v15 = vsub.f32 %v730_v63, %v738_v13  ;;  %v623_v33 = vsub.f32 %v610_v59, %v619_v29 }
 0x22e   : > { %v1739_v16 = vpop.eup %1383  ;;  %v743_v17 = vmul.f32 1.442695, %v740_v15  ;;  %v625_v36 = vmul.f32 1.442695, %v623_v33 }
 0x22f   : > { %v745_v19 = vsel %vm616_vm2, %v1739_v16, 0.0 }
 0x230   : > { %1385 = vpow2.f32 %v743_v17  ;;  %746 = vadd.xlane.f32.xlu1 %v745_v19 }
 0x233   : > { %v975_v22 = vpop.xlane.xlu2 %974  ;;  %v859_v37 = vpop.xlane.xlu1 %858 }
 0x234   : > { %v979_v24 = vsub.f32 %v967_v3, %v975_v22  ;;  %v863_v39 = vsub.f32 %v851_v2, %v859_v37 }
 0x236   : > { %v1743_v25 = vpop.eup %1385  ;;  %v981_v26 = vmul.f32 1.442695, %v979_v24  ;;  %v865_v41 = vmul.f32 1.442695, %v863_v39 }
 0x237   : > { %v748_v27 = vsel %vm616_vm2, %v1743_v25, 0.0 }
 0x238   : > { %1387 = vpow2.f32 %v981_v26  ;;  %749 = vadd.xlane.f32.xlu0 %v748_v27  ;;  %861 = vmax.xlane.f32.xlu1 %v860_v28 }
 0x23b   : > { %v978_v30 = vpop.xlane.xlu2 %977 }
 0x23c   : > { %v980_v31 = vsub.f32 %v970_v6, %v978_v30 }
 0x23e   : > { %v1748_v32 = vpop.eup %1387  ;;  %v983_v34 = vmul.f32 1.442695, %v980_v31 }
 0x23f   : > { %v985_v35 = vsel %vm616_vm2, %v1748_v32, 0.0 }
 0x240   : > { %1389 = vpow2.f32 %v983_v34  ;;  %986 = vadd.xlane.f32.xlu2 %v985_v35 }
 0x241   : > { %1391 = vpow2.f32 %v625_v36 }
 0x242   : > { %1393 = vpow2.f32 %v865_v41 }
 0x243   : > { %v622_v48 = vpop.xlane.xlu2 %621 }
 0x244   : > { %v624_v51 = vsub.f32 %v1729_v62, %v622_v48 }
 0x246   : > { %v1752_v38 = vpop.eup %1389  ;;  %v627_v52 = vmul.f32 1.442695, %v624_v51 }
 0x247   : > { %v988_v40 = vsel %vm616_vm2, %v1752_v38, 0.0  ;;  %v1756_v42 = vpop.eup %1391 }
 0x248   : > { %989 = vadd.xlane.f32.xlu2 %v988_v40  ;;  %v629_v44 = vsel %vm616_vm2, %v1756_v42, 0.0  ;;  %v1765_v45 = vpop.eup %1393  ;;  %1395 = vpow2.f32 %v627_v52 }
 0x249   : > { %v869_v46 = vsel %vm616_vm2, %v1765_v45, 0.0 }
 0x24c   : > { %1361 = vrot.lane.b32.xlu0 %v1360_v50, %s1973_s30 }
 0x24e   : > { %v1770_v47 = vpop.eup %1395 }
 0x24f   : > { %v632_v49 = vsel %vm616_vm2, %v1770_v47, 0.0 }
 0x250   : > { %630 = vadd.xlane.f32.xlu2 %v629_v44 }
 0x251   : > { %1366 = vrot.lane.b32.xlu1 %v1365_v43, %s1973_s30 }
 0x258   : > { %870 = vadd.xlane.f32.xlu2 %v869_v46 }
 0x276   : > { %633 = vadd.xlane.f32.xlu0 %v632_v49 }
 0x2a3   : > { %v747_v50 = vpop.xlane.xlu1 %746 }
 0x2a4   : > { %1397 = vrcp.f32 %v747_v50  ;;  %v762_v4 = vand.u32 2147483648, %v747_v50  ;;  %vm756_vm4 = vweird.f32 %v747_v50  ;;  %v760_v6 = vand.u32 2147483647, %v747_v50 }
 0x2a6   : > { %v763_v11 = vor.u32 1.1754944e-38, %v762_v4  ;;  %vm761_vm6 = vcmp.eq.f32.partialorder %v760_v6, 8.507059e+37 }
 0x2aa   : > { %v1398_v53 = vpop.eup %1397 }
 0x2ab   : > { %v750_v54 = vpop.xlane.xlu0 %749  ;;  %v862_v55 = vpop.xlane.xlu1 %861  ;;  %v752_v56 = vmul.f32 %v1398_v53, %v747_v50  ;;  %vm757_vm3 = vweird.f32 %v1398_v53 }
 0x2ac   : > { %1399 = vrcp.f32 %v750_v54  ;;  %v864_v57 = vsub.f32 %v854_v23, %v862_v55  ;;  %vm758_vm5 = vmor %vm756_vm4, %vm757_vm3  ;;  %v777_v18 = vand.u32 2147483648, %v750_v54  ;;  %vm771_vm8 = vweird.f32 %v750_v54 }
 0x2ad   : > { %v753_v59 = vsub.f32 1.0, %v752_v56  ;;  %v775_v22 = vand.u32 2147483647, %v750_v54 }
 0x2ae   : > { %v867_v58 = vmul.f32 1.442695, %v864_v57  ;;  %v778_v29 = vor.u32 1.1754944e-38, %v777_v18 }
 0x2af   : > { %v754_v62 = vmul.f32 %v1398_v53, %v753_v59  ;;  %vm776_vm10 = vcmp.eq.f32.partialorder %v775_v22, 8.507059e+37 }
 0x2b0   : > { %1401 = vpow2.f32 %v867_v58 }
 0x2b1   : > { %v755_v2 = vadd.f32 %v1398_v53, %v754_v62 }
 0x2b2   : > { %v1400_v60 = vpop.eup %1399 }
 0x2b3   : > { %v1774_v61 = vpop.xlane.xlu2 %986  ;;  %v767_v63 = vmul.f32 %v1400_v60, %v750_v54  ;;  %v759_v8 = vsel %vm758_vm5, %v1398_v53, %v755_v2  ;;  %vm772_vm7 = vweird.f32 %v1400_v60 }
 0x2b4   : > { %1403 = vrcp.f32 %v1774_v61  ;;  %v764_v13 = vsel %vm761_vm6, %v763_v11, %v759_v8  ;;  %vm773_vm9 = vmor %vm771_vm8, %vm772_vm7  ;;  %v1002_v35 = vand.u32 2147483648, %v1774_v61  ;;  %vm996_vm12 = vweird.f32 %v1774_v61 }
 0x2b5   : > { %v768_v3 = vsub.f32 1.0, %v767_v63  ;;  %v765_v21 = vmul.f32 %v1739_v16, %v764_v13  ;;  %v1000_v37 = vand.u32 2147483647, %v1774_v61 }
 0x2b6   : > { %v1777_v0 = vpop.eup %1401  ;;  %v1003_v44 = vor.u32 1.1754944e-38, %v1002_v35 }
 0x2b7   : > { %v872_v1 = vsel %vm616_vm2, %v1777_v0, 0.0  ;;  %v769_v9 = vmul.f32 %v1400_v60, %v768_v3  ;;  %vm1001_vm14 = vcmp.eq.f32.partialorder %v1000_v37, 8.507059e+37 }
 0x2b8   : > { %873 = vadd.xlane.f32.xlu2 %v872_v1 }
 0x2b9   : > { %v770_v17 = vadd.f32 %v1400_v60, %v769_v9 }
 0x2ba   : > { %v1404_v5 = vpop.eup %1403 }
 0x2bb   : > { %v1781_v7 = vpop.xlane.xlu2 %989  ;;  %v992_v10 = vmul.f32 %v1404_v5, %v1774_v61  ;;  %v774_v28 = vsel %vm773_vm9, %v1400_v60, %v770_v17  ;;  %vm997_vm11 = vweird.f32 %v1404_v5 }
 0x2bc   : > { %1405 = vrcp.f32 %v1781_v7  ;;  %v779_v33 = vsel %vm776_vm10, %v778_v29, %v774_v28  ;;  %vm998_vm13 = vmor %vm996_vm12, %vm997_vm11  ;;  %vm1011_vm4 = vweird.f32 %v1781_v7  ;;  %v1015_v56 = vand.u32 2147483647, %v1781_v7 }
 0x2bd   : > { %v993_v15 = vsub.f32 1.0, %v992_v10  ;;  %v780_v39 = vmul.f32 %v1743_v25, %v779_v33  ;;  %v1017_v25 = vand.u32 2147483648, %v1781_v7 }
 0x2be   : > { %v1362_v12 = vpop.permute.xlu0 %1361  ;;  %vm1016_vm8 = vcmp.eq.f32.partialorder %v1015_v56, 8.507059e+37  ;;  %v1086_v56 = vld [vmem:[%s1963_s9 + $0x40] sm:$0xff] }
 0x2bf   : > { %v1363_v14 = vunpack.i.l.bf16 %v1362_v12  ;;  %v1364_v19 = vunpack.i.h.bf16 %v1362_v12  ;;  %v994_v26 = vmul.f32 %v1404_v5, %v993_v15  ;;  %v1018_v60 = vor.u32 1.1754944e-38, %v1017_v25  ;;  %v1088_v25 = vld [vmem:[%s1963_s9 + $0x50] sm:$0xff] }
 0x2c1   : > { %809 = vmatpush.msra.mxu3 %v1363_v14  ;;  %v995_v16 = vadd.f32 %v1404_v5, %v994_v26 }
 0x2c2   : > { %v1785_v20 = vpop.eup %1405 }
 0x2c3   : > { %810 = vmatpush.msra.mxu3 %v1364_v19  ;;  %v631_v23 = vpop.xlane.xlu2 %630  ;;  %v1367_v24 = vpop.permute.xlu1 %1366  ;;  %v1007_v27 = vmul.f32 %v1785_v20, %v1781_v7  ;;  %v999_v41 = vsel %vm998_vm13, %v1404_v5, %v995_v16  ;;  %vm1012_vm0 = vweird.f32 %v1785_v20 }
 0x2c4   : > { %1407 = vrcp.f32 %v631_v23  ;;  %1293 = vmatmul.msk.f32.vlgmr.msra.gmra.mxu3 %vm616_vm2, %v765_v21  ;;  %v1369_v30 = vunpack.i.h.bf16 %v1367_v24  ;;  %v1368_v31 = vunpack.i.l.bf16 %v1367_v24  ;;  %v646_v48 = vand.u32 2147483648, %v631_v23  ;;  %vm1013_vm7 = vmor %vm1011_vm4, %vm1012_vm0 }
 0x2c5   : > { %v1008_v34 = vsub.f32 1.0, %v1007_v27  ;;  %v1004_v51 = vsel %vm1001_vm14, %v1003_v44, %v999_v41  ;;  %v644_v49 = vand.u32 2147483647, %v631_v23  ;;  %vm640_vm3 = vweird.f32 %v631_v23  ;;  %v1093_v41 = vld [vmem:[%s1963_s9 + $0x78] sm:$0xff]  ;;  %v1108_v44 = vld [vmem:[%s1963_s9 + $0xf0] sm:$0xff] }
 0x2c6   : > { %1049 = vmatpush.msrb.mxu3 %v1368_v31  ;;  %v647_v54 = vor.u32 1.1754944e-38, %v646_v48  ;;  %v1005_v55 = vmul.f32 %v1748_v32, %v1004_v51  ;;  %1114 = vmatpush.msra.mxu0 %v1093_v41  ;;  %v1107_v48 = vld [vmem:[%s1963_s9 + $0xe8] sm:$0xff]  ;;  %v1090_v51 = vld [vmem:[%s1963_s9 + $0x60] sm:$0xff] }
 0x2c7   : > { %v1009_v43 = vmul.f32 %v1785_v20, %v1008_v34  ;;  %vm645_vm6 = vcmp.eq.f32.partialorder %v644_v49, 8.507059e+37  ;;  %v1089_v49 = vld [vmem:[%s1963_s9 + $0x58] sm:$0xff] }
 0x2c8   : > { %1050 = vmatpush.msrb.mxu3 %v1369_v30 }
 0x2c9   : > { %v1010_v50 = vadd.f32 %v1785_v20, %v1009_v43  ;;  %v1092_v43 = vld [vmem:[%s1963_s9 + $0x70] sm:$0xff] }
 0x2ca   : > { %v1408_v36 = vpop.eup %1407  ;;  %1115 = vmatpush.msra.mxu0 %v1092_v43 }
 0x2cb   : > { %v636_v40 = vmul.f32 %v1408_v36, %v631_v23  ;;  %vm641_vm15 = vweird.f32 %v1408_v36  ;;  %v1014_v59 = vsel %vm1013_vm7, %v1785_v20, %v1010_v50  ;;  %v871_v63 = vpop.xlane.xlu2 %870  ;;  %v1105_v50 = vld [vmem:[%s1963_s9 + $0xd8] sm:$0xff] }
 0x2cc   : > { %1294 = vmatmul.msk.f32.gmra.mxu3 %vm616_vm2, %v780_v39  ;;  %vm642_vm5 = vmor %vm640_vm3, %vm641_vm15  ;;  %v1019_v62 = vsel %vm1016_vm8, %v1018_v60, %v1014_v59  ;;  %1409 = vrcp.f32 %v871_v63  ;;  %v886_v14 = vand.u32 2147483648, %v871_v63  ;;  %vm880_vm14 = vweird.f32 %v871_v63  ;;  %v1101_v59 = vld [vmem:[%s1963_s9 + $0xb8] sm:$0xff]  ;;  %v1084_v60 = vld [vmem:[%s1963_s9 + $0x30] sm:$0xff] }
 0x2cd   : > { %v637_v46 = vsub.f32 1.0, %v636_v40  ;;  %v1020_v32 = vmul.f32 %v1752_v38, %v1019_v62  ;;  %v884_v17 = vand.u32 2147483647, %v871_v63  ;;  %v1083_v62 = vld [vmem:[%s1963_s9 + $0x28] sm:$0xff] }
 0x2ce   : > { %v887_v20 = vor.u32 1.1754944e-38, %v886_v14 }
 0x2cf   : > { %v638_v52 = vmul.f32 %v1408_v36, %v637_v46  ;;  %vm885_vm0 = vcmp.eq.f32.partialorder %v884_v17, 8.507059e+37  ;;  %v1091_v46 = vld [vmem:[%s1963_s9 + $0x68] sm:$0xff] }
 0x2d0   : > { %1116 = vmatpush.msra.mxu0 %v1091_v46 }
 0x2d1   : > { %v639_v53 = vadd.f32 %v1408_v36, %v638_v52  ;;  %v1106_v52 = vld [vmem:[%s1963_s9 + $0xe0] sm:$0xff] }
 0x2d2   : > { %v1410_v2 = vpop.eup %1409  ;;  %1117 = vmatpush.msra.mxu0 %v1090_v51 }
 0x2d3   : > { %v643_v57 = vsel %vm642_vm5, %v1408_v36, %v639_v53  ;;  %v876_v3 = vmul.f32 %v1410_v2, %v871_v63  ;;  %vm881_vm12 = vweird.f32 %v1410_v2  ;;  %v1104_v53 = vld [vmem:[%s1963_s9 + $0xd0] sm:$0xff]  ;;  %v1082_v63 = vld [vmem:[%s1963_s9 + $0x20] sm:$0xff] }
 0x2d4   : > { %1305 = vmatmul.msk.f32.vlgmr.msrb.gmra.mxu3 %vm616_vm2, %v1005_v55  ;;  %v648_v58 = vsel %vm645_vm6, %v647_v54, %v643_v57  ;;  %vm882_vm15 = vmor %vm880_vm14, %vm881_vm12  ;;  %1118 = vmatpush.msra.mxu0 %v1089_v49  ;;  %v1087_v54 = vld [vmem:[%s1963_s9 + $0x48] sm:$0xff]  ;;  %v1102_v57 = vld [vmem:[%s1963_s9 + $0xc0] sm:$0xff] }
 0x2d5   : > { %v649_v61 = vmul.f32 %v1756_v42, %v648_v58  ;;  %v877_v5 = vsub.f32 1.0, %v876_v3  ;;  %v1103_v55 = vld [vmem:[%s1963_s9 + $0xc8] sm:$0xff]  ;;  %v1085_v58 = vld [vmem:[%s1963_s9 + $0x38] sm:$0xff] }
 0x2d6   : > { %1119 = vmatpush.msra.mxu0 %v1088_v25  ;;  %v1097_v3 = vld [vmem:[%s1963_s9 + $0x98] sm:$0xff] }
 0x2d7   : > { %1287 = vmatmul.msk.f32.vlgmr.msra.gmra.mxu1 %vm616_vm2, %v649_v61  ;;  %v878_v42 = vmul.f32 %v1410_v2, %v877_v5  ;;  %v1100_v61 = vld [vmem:[%s1963_s9 + $0xb0] sm:$0xff] }
 0x2d8   : > { %1120 = vmatpush.msra.mxu0 %v1087_v54  ;;  %v1096_v5 = vld [vmem:[%s1963_s9 + $0x90] sm:$0xff] }
 0x2d9   : > { %v879_v12 = vadd.f32 %v1410_v2, %v878_v42  ;;  %v1094_v42 = vld [vmem:[%s1963_s9 + $0x80] sm:$0xff] }
 0x2da   : > { %1121 = vmatpush.msra.mxu0 %v1086_v56 }
 0x2db   : > { %v883_v19 = vsel %vm882_vm15, %v1410_v2, %v879_v12  ;;  %v1081_v2 = vld [vmem:[%s1963_s9 + $0x18] sm:$0xff] }
 0x2dc   : > { %1306 = vmatmul.msk.f32.gmra.mxu3 %vm616_vm2, %v1020_v32  ;;  %v888_v21 = vsel %vm885_vm0, %v887_v20, %v883_v19  ;;  %1122 = vmatpush.msra.mxu0 %v1085_v58  ;;  %v1099_v32 = vld [vmem:[%s1963_s9 + $0xa8] sm:$0xff] }
 0x2dd   : > { %v889_v22 = vmul.f32 %v1765_v45, %v888_v21 }
 0x2de   : > { %1123 = vmatpush.msra.mxu0 %v1084_v60 }
 0x2e0   : > { %1124 = vmatpush.msra.mxu0 %v1083_v62 }
 0x2e2   : > { %1125 = vmatpush.msra.mxu0 %v1082_v63 }
 0x2e4   : > { %1126 = vmatpush.msra.mxu0 %v1081_v2 }
 0x2e9   : > { %v634_v1 = vpop.xlane.xlu0 %633 }
 0x2ea   : > { %1411 = vrcp.f32 %v634_v1  ;;  %v661_v8 = vand.u32 2147483648, %v634_v1  ;;  %v659_v10 = vand.u32 2147483647, %v634_v1  ;;  %vm655_vm10 = vweird.f32 %v634_v1 }
 0x2ec   : > { %v662_v38 = vor.u32 1.1754944e-38, %v661_v8  ;;  %vm660_vm13 = vcmp.eq.f32.partialorder %v659_v10, 8.507059e+37  ;;  %v1078_v8 = vld [vmem:[%s1963_s9] sm:$0xff] }
 0x2f0   : > { %v1412_v4 = vpop.eup %1411 }
 0x2f1   : > { %v651_v6 = vmul.f32 %v1412_v4, %v634_v1  ;;  %vm656_vm9 = vweird.f32 %v1412_v4  ;;  %v1098_v1 = vld [vmem:[%s1963_s9 + $0xa0] sm:$0xff] }
 0x2f2   : > { %vm657_vm11 = vmor %vm655_vm10, %vm656_vm9 }
 0x2f3   : > { %v652_v7 = vsub.f32 1.0, %v651_v6  ;;  %v1079_v6 = vld [vmem:[%s1963_s9 + $0x8] sm:$0xff] }
 0x2f5   : > { %v653_v9 = vmul.f32 %v1412_v4, %v652_v7  ;;  %v1095_v7 = vld [vmem:[%s1963_s9 + $0x88] sm:$0xff] }
 0x2f7   : > { %v654_v11 = vadd.f32 %v1412_v4, %v653_v9 }
 0x2f9   : > { %v658_v13 = vsel %vm657_vm11, %v1412_v4, %v654_v11  ;;  %v1080_v4 = vld [vmem:[%s1963_s9 + $0x10] sm:$0xff] }
 0x2fa   : > { %v663_v15 = vsel %vm660_vm13, %v662_v38, %v658_v13  ;;  %1127 = vmatpush.msra.mxu0 %v1080_v4 }
 0x2fb   : > { %v664_v18 = vmul.f32 %v1770_v47, %v663_v15 }
 0x2fc   : > { %1128 = vmatpush.msra.mxu0 %v1079_v6 }
 0x2fd   : > { %1288 = vmatmul.msk.f32.gmra.mxu1 %vm616_vm2, %v664_v18 }
 0x2fe   : > { %1129 = vmatpush.msra.mxu0 %v1078_v8 }
 0x305   : > { %1299 = vmatmul.msk.f32.vlgmr.msrb.gmra.mxu1 %vm616_vm2, %v889_v22 }
 0x32b   : > { %v874_v23 = vpop.xlane.xlu2 %873 }
 0x32c   : > { %1413 = vrcp.f32 %v874_v23  ;;  %v901_v28 = vand.u32 2147483648, %v874_v23  ;;  %v899_v47 = vand.u32 2147483647, %v874_v23  ;;  %vm895_vm4 = vweird.f32 %v874_v23 }
 0x32e   : > { %v902_v31 = vor.u32 1.1754944e-38, %v901_v28  ;;  %vm900_vm6 = vcmp.eq.f32.partialorder %v899_v47, 8.507059e+37 }
 0x332   : > { %v1414_v24 = vpop.eup %1413 }
 0x333   : > { %v891_v26 = vmul.f32 %v1414_v24, %v874_v23  ;;  %vm896_vm3 = vweird.f32 %v1414_v24  ;;  %v1382_v23 = vld [vmem:[%s1964_s10] ss:$0 sm:$0xff] }
 0x334   : > { %vm897_vm5 = vmor %vm895_vm4, %vm896_vm3 }
 0x335   : > { %v892_v27 = vsub.f32 1.0, %v891_v26 }
 0x337   : > { %v893_v29 = vmul.f32 %v1414_v24, %v892_v27 }
 0x339   : > { %v894_v30 = vadd.f32 %v1414_v24, %v893_v29 }
 0x33b   : > { %v898_v33 = vsel %vm897_vm5, %v1414_v24, %v894_v30 }
 0x33c   : > { %v903_v16 = vsel %vm900_vm6, %v902_v31, %v898_v33 }
 0x33d   : > { %v904_v45 = vmul.f32 %v1777_v0, %v903_v16  ;;  %v1109_v0 = vld [vmem:[%s1963_s9 + $0xf8] sm:$0xff] }
 0x33e   : > { %1137 = vmatpush.msra.mxu1 %v1109_v0 }
 0x33f   : > { %1300 = vmatmul.msk.f32.gmra.mxu1 %vm616_vm2, %v904_v45 }
 0x340   : > { %1138 = vmatpush.msra.mxu1 %v1108_v44 }
 0x342   : > { %1139 = vmatpush.msra.mxu1 %v1107_v48 }
 0x344   : > { %1140 = vmatpush.msra.mxu1 %v1106_v52 }
 0x346   : > { %1141 = vmatpush.msra.mxu1 %v1105_v50 }
 0x347   : > { %v812_v34 = vpop.f32.mrf.mxu3 }
 0x348   : > { %1142 = vmatpush.msra.mxu1 %v1104_v53 }
 0x34a   : > { %1143 = vmatpush.msra.mxu1 %v1103_v55 }
 0x34c   : > { %1144 = vmatpush.msra.mxu1 %v1102_v57 }
 0x34e   : > { %1145 = vmatpush.msra.mxu1 %v1101_v59 }
 0x34f   : > { %v815_v35 = vpop.f32.mrf.mxu3 }
 0x350   : > { %1146 = vmatpush.msra.mxu1 %v1100_v61 }
 0x352   : > { %1147 = vmatpush.msra.mxu1 %v1099_v32 }
 0x354   : > { %1148 = vmatpush.msra.mxu1 %v1098_v1  ;;  %v688_v9 = vpop.f32.mrf.mxu1 }
 0x356   : > { %1149 = vmatpush.msra.mxu1 %v1097_v3 }
 0x357   : > { %v1052_v36 = vpop.f32.mrf.mxu3 }
 0x358   : > { %v1370_v37 = vpack.i.bf16 %v1052_v36, %v812_v34  ;;  %1150 = vmatpush.msra.mxu1 %v1096_v5 }
 0x35a   : > { %1371 = vrot.lane.b32.xlu1 %v1370_v37, %s1973_s30  ;;  %1151 = vmatpush.msra.mxu1 %v1095_v7 }
 0x35c   : > { %1152 = vmatpush.msra.mxu1 %v1094_v42 }
 0x35f   : > { %v1055_v39 = vpop.f32.mrf.mxu3 }
 0x360   : > { %v1375_v40 = vpack.i.bf16 %v1055_v39, %v815_v35 }
 0x362   : > { %1376 = vrot.lane.b32.xlu2 %v1375_v40, %s1973_s30 }
 0x37a   : > { %v691_v10 = vpop.f32.mrf.mxu1 }
 0x382   : > { %v928_v13 = vpop.f32.mrf.mxu1 }
 0x3bc   : > { %v1377_v17 = vpop.permute.xlu2 %1376  ;;  %v931_v20 = vpop.f32.mrf.mxu1 }
 0x3bd   : > { %v1379_v18 = vunpack.i.h.bf16 %v1377_v17  ;;  %v1378_v19 = vunpack.i.l.bf16 %v1377_v17 }
 0x3bf   : > { %v1075_v21 = vsel %vm528_vm1, %v691_v10, %v1378_v19  ;;  %v1077_v22 = vsel %vm528_vm1, %v931_v20, %v1379_v18 }
 0x3cc   : > { %v1372_v11 = vpop.permute.xlu1 %1371 }
 0x3cd   : > { %v1374_v38 = vunpack.i.h.bf16 %v1372_v11  ;;  %v1373_v12 = vunpack.i.l.bf16 %v1372_v11 }
 0x3cf   : > { %v1074_v14 = vsel %vm528_vm1, %v688_v9, %v1373_v12  ;;  %v1076_v15 = vsel %vm528_vm1, %v928_v13, %v1374_v38 }
 0x3d0   : > { %1130 = vmatmul.f32.vlgmr.msra.gmra.mxu0 %v1074_v14  ;;  %1153 = vmatmul.f32.vlgmr.msra.gmra.mxu1 %v1076_v15 }
 0x3d8   : > { %1133 = vmatmul.f32.gmra.mxu0 %v1075_v21  ;;  %1156 = vmatmul.f32.gmra.mxu1 %v1077_v22 }
 0x44d   : > { %v1131_v24 = vpop.f32.mrf.mxu0  ;;  %v1154_v26 = vpop.f32.mrf.mxu1 }
 0x44e   : > { %v1132_v27 = vadd.f32 %v1382_v23, %v1131_v24 }
 0x450   : > { %v1155_v28 = vadd.f32 %v1154_v26, %v1132_v27 }
 0x452   : > { %1160 = vst.msk [vmem:[%s409_s25] sm:$0xff] %vm528_vm1, %v1155_v28 }
 0x455   : > { %v1134_v29 = vpop.f32.mrf.mxu0  ;;  %v1157_v30 = vpop.f32.mrf.mxu1 }
 0x456   : > { %v1135_v47 = vadd.f32 %v1382_v23, %v1134_v29 }
 0x458   : > { %v1158_v31 = vadd.f32 %v1157_v30, %v1135_v47 }
 0x45a   : > { %1161 = vst.msk [vmem:[%s409_s25 + $0x8] sm:$0xff] %vm528_vm1, %v1158_v31 }
 0x45b   : > { %1442 = shalt.err (!%p1439_p3)
}
 0x45c   : > { %s1482_s24 = smov 128   ;;  %s1483_s25 = smov 8  }
 0x45d   : > { %1316 = dma.vmem_to_hbm [thread:$0]  (%p1582_p5), %s1176_s26, 256, %s1178_s12, %s1163_s21, %s1482_s24, %s1482_s24, %s1483_s25  }
 0x45e PF: > { %p1322_p4 = scmp.ge.s32.totalorder %s1477_s20, 2  ;;  %s1192_s13 = sand.u32 1, %s1465_s17  }
 0x45f   : > { %s1193_s16 = scalar_lea.sflag [#allocation3], %s1192_s13 }
 0x460   : > { %p1319_p7 = pnand %p1322_p4, %p1586_p6 }
 0x462   : > { %p1320_p8 = pneg %p1319_p7 }
 0x464   : > { %1460 = dma.done.wait (%p1320_p8), %s1193_s16, 256  }
 0x465   : > { %1462 = vsyncadd (%p1320_p8), %s1193_s16, 4294967040  ;;  %s1974_s22 = sld [smem:[#allocation5_spill]]  ;;  %p21_p9 = scmp.ge.s32.totalorder %s1569_s23, 4  }
 0x466   : > { %s1975_s17 = smov %s1469_s18  ;;  %s1976_s18 = smov %s1473_s19 }
 0x467   : > { %s1978_s20 = smov %s1569_s23  ;;  %23 = sbr.rel (!%p21_p9) target bundleno = 5 (0x5), region = 105 }
 0x46b   : > { %s1977_s19 = smov %s1974_s22 }
 0x46c   :  { %1199 = vsyncpa [#allocation3], 1 }
 0x46d   :  { %1201 = vsyncpa [#allocation3 + $0x1], 1 }

</bundles_post_ra>
